<compile_context>
chip_gen: v7x
topology: tpu7x:2x2x1
jax: 0.10.0
libtpu: 0.0.40
codegen_flags: <defaults>
</compile_context>

<pallas_src>
import math

import jax
import jax.numpy as jnp
import numpy as np
from jax.experimental import pallas as pl
from jax.experimental.pallas import tpu as pltpu


def _make_kernel(confidence: float, fill: float, c_row: float,
                 n_rows: int, v_total: int, tail_mask: bool):
    """Build the label-smoothing KLDiv kernel with compile-time constants."""

    def kernel(x_ref, tgt_ref, msk_ref, out_ref, acc_ref):
        i = pl.program_id(0)      # row-block index
        vj = pl.program_id(1)     # vocab-block index (innermost, reduction)

        @pl.when(vj == 0)
        def _init():
            acc_ref[...] = jnp.zeros_like(acc_ref)

        x = x_ref[...].astype(jnp.float32)                      # (rt, vt) f32
        rt, vt = x.shape
        cols = jax.lax.broadcasted_iota(jnp.int32, (rt, vt), 1)

        if tail_mask:
            # Ragged vocab tail: zero stale/OOB columns BEFORE the multiply so
            # garbage (possibly NaN) never contaminates the fill*sum term.
            x = jnp.where(cols < (v_total - vj * vt), x, 0.0)

        # Fused weighted reduction: w = confidence at the target column, fill
        # elsewhere.  Targets outside this block (or sentinel/out-of-range
        # targets) simply never match; masked rows rely on the mask, like the
        # original module.
        tgt_local = tgt_ref[...] - vj * vt                      # (rt, 1) i32
        w = jnp.where(cols == tgt_local, confidence, fill)      # (rt, vt) f32
        wx = w * x

        acc_lanes = acc_ref.shape[1]
        if acc_lanes == 1:
            # Single (ragged-width) vocab block: plain row reduce.
            acc_ref[...] += jnp.sum(wx, axis=1, keepdims=True)
        else:
            # Lane-partial accumulation: vreg-aligned VPU adds only, no XLU.
            partial = wx[:, 0:acc_lanes]
            for k in range(1, vt // acc_lanes):
                partial = partial + wx[:, k * acc_lanes:(k + 1) * acc_lanes]
            acc_ref[...] += partial

        @pl.when(vj == pl.num_programs(1) - 1)
        def _finalize():
            row_sum = jnp.sum(acc_ref[...], axis=1, keepdims=True)   # (rt, 1)
            row_loss = c_row - row_sum
            rows = i * rt + jax.lax.broadcasted_iota(jnp.int32, (rt, 1), 0)
            # Zero out-of-range rows of the (possibly partial) last row block;
            # jnp.where is a select, so stale/NaN data cannot leak through.
            contrib = jnp.where(rows < n_rows, row_loss * msk_ref[...], 0.0)
            out_ref[0] = jnp.sum(contrib, axis=0, keepdims=True)     # (1, 1)

    return kernel


def _choose_v_tile(V: int, itemsize: int, row_tile: int,
                   single_block_max: int = 2048,
                   vmem_tile_budget: int = 24 << 20) -> int:
    """Pick a lane-dense vocab tile; ragged tails are masked in-kernel."""
    if V <= single_block_max:
        return V                                  # one (possibly ragged) block
    budget_vt = vmem_tile_budget // (2 * row_tile * itemsize)   # double-buffered
    vt = min(4096, (budget_vt // 128) * 128)
    vt = max(vt, 512)
    vt = min(vt, (V // 128) * 128)                # never exceed the array extent
    return vt


def label_smoothing_loss(inp, target, mask, smoothing=0.0, *, row_tile=512,
                         use_gather_fast_path=True):
    """Pallas equivalent of LabelSmoothing.forward.

    inp:    (B, T, V) float log-probabilities (any float dtype; bf16 stays bf16)
    target: (B, T_full) int labels (T_full >= T)
    mask:   (B, T_full) float mask
    """
    B, T, V = inp.shape
    confidence = 1.0 - smoothing
    fill = smoothing / (V - 1)
    c_row = 0.0
    if confidence > 0.0:
        c_row += confidence * math.log(confidence)
    if fill > 0.0:
        c_row += (V - 1) * fill * math.log(fill)

    N = B * T
    x = inp.reshape(N, V)
    if x.dtype == jnp.float64:
        x = x.astype(jnp.float32)
    tgt = target[:, :T].reshape(N, 1).astype(jnp.int32)
    msk = mask[:, :T].reshape(N, 1).astype(jnp.float32)

    if use_gather_fast_path and fill == 0.0:
        # smoothing == 0: only x[row, tgt[row]] matters -- skip the (N, V) scan.
        picked = jnp.take_along_axis(x, tgt, axis=1).astype(jnp.float32)
        per_row = c_row - (confidence - fill) * picked           # (N, 1)
        return jnp.sum(per_row * msk) / jnp.sum(msk)

    # --- tiling --------------------------------------------------------------
    row_tile = max(8, (int(row_tile) // 8) * 8)
    if N > 8:
        # >= 2 row blocks so the "parallel" row axis can feed both v7x cores.
        row_tile = min(row_tile, pl.cdiv(pl.cdiv(N, 2), 8) * 8)
    row_tile = min(row_tile, pl.cdiv(N, 8) * 8)

    v_tile = _choose_v_tile(V, x.dtype.itemsize, row_tile)
    n_row_blocks = pl.cdiv(N, row_tile)
    n_v_blocks = pl.cdiv(V, v_tile)
    tail_mask = (V % v_tile) != 0
    acc_lanes = 128 if (v_tile % 128) == 0 else 1

    kernel = _make_kernel(confidence, fill, c_row, N, V, tail_mask)

    # VMEM budget: x double-buffered + acc + tgt/msk/out columns + slack.
    x_tile_bytes = row_tile * v_tile * x.dtype.itemsize
    est = 2 * x_tile_bytes + row_tile * acc_lanes * 4 + 8 * row_tile * 4 + (1 << 20)
    vmem_limit = int(min(max(2 * est, 16 << 20), 40 << 20))   # <= 40 MiB for v7x

    block_sums = pl.pallas_call(
        kernel,
        out_shape=jax.ShapeDtypeStruct((n_row_blocks, 1, 1), jnp.float32),
        grid_spec=pltpu.PrefetchScalarGridSpec(
            num_scalar_prefetch=0,
            grid=(n_row_blocks, n_v_blocks),
            in_specs=[
                pl.BlockSpec((row_tile, v_tile), lambda i, j: (i, j)),
                pl.BlockSpec((row_tile, 1), lambda i, j: (i, 0)),
                pl.BlockSpec((row_tile, 1), lambda i, j: (i, 0)),
            ],
            out_specs=pl.BlockSpec((1, 1, 1), lambda i, j: (i, 0, 0)),
            scratch_shapes=[pltpu.VMEM((row_tile, acc_lanes), jnp.float32)],
        ),
        compiler_params=pltpu.CompilerParams(
            dimension_semantics=("parallel", "arbitrary"),
            vmem_limit_bytes=vmem_limit,
        ),
    )(x, tgt, msk)

    # TODO(synk): no guard for an all-zero mask (matches the PyTorch module's
    #             nan/inf behaviour).
    return jnp.sum(block_sums) / jnp.sum(msk)


def _reference(inp, target, mask, smoothing):
    """Pure-JAX reference of the PyTorch forward for self-checking."""
    B, T, V = inp.shape
    confidence = 1.0 - smoothing
    fill = smoothing / (V - 1)
    x = inp.reshape(B * T, V).astype(jnp.float32)
    tgt = target[:, :T].reshape(-1)
    msk = mask[:, :T].reshape(-1).astype(jnp.float32)
    true_dist = jnp.full((B * T, V), fill, dtype=jnp.float32)
    true_dist = true_dist.at[jnp.arange(B * T), tgt].set(confidence)
    kld = jnp.where(true_dist > 0,
                    true_dist * (jnp.log(jnp.maximum(true_dist, 1e-30)) - x),
                    0.0)
    return (kld.sum(1) * msk).sum() / msk.sum()


if __name__ == "__main__":
    key = jax.random.PRNGKey(0)

    # Case 1: small vocab (single, ragged vocab block), small sequence.
    B, T_full, T, V = 2, 10, 8, 32
    k1, k2, k3 = jax.random.split(key, 3)
    logits = jax.random.normal(k1, (B, T, V), dtype=jnp.float32)
    inp = jax.nn.log_softmax(logits, axis=-1)               # log-probs
    target = jax.random.randint(k2, (B, T_full), 0, V, dtype=jnp.int32)
    lens = jnp.array([7, 5], dtype=jnp.int32)
    mask = (jnp.arange(T_full)[None, :] < lens[:, None]).astype(jnp.float32)

    for smoothing, fast in ((0.1, True), (0.0, True), (0.0, False)):
        out = label_smoothing_loss(inp, target, mask, smoothing=smoothing,
                                   use_gather_fast_path=fast)
        out = jax.block_until_ready(out)
        ref = _reference(inp, target, mask, smoothing)
        np.testing.assert_allclose(np.asarray(out), np.asarray(ref),
                                   rtol=1e-5, atol=1e-5)

    # Case 2: vocab spanning multiple tiles with a ragged tail (masked
    # in-kernel, no jnp.pad), partial last row block, f32 and bf16 inputs.
    B2, T2_full, T2, V2 = 2, 9, 7, 2500
    k4, k5 = jax.random.split(k3)
    logits2 = jax.random.normal(k4, (B2, T2, V2), dtype=jnp.float32)
    inp2 = jax.nn.log_softmax(logits2, axis=-1)
    target2 = jax.random.randint(k5, (B2, T2_full), 0, V2, dtype=jnp.int32)
    mask2 = (jnp.arange(T2_full)[None, :]
             < jnp.array([6, 4], dtype=jnp.int32)[:, None]).astype(jnp.float32)

    out2 = jax.block_until_ready(
        label_smoothing_loss(inp2, target2, mask2, smoothing=0.1))
    ref2 = _reference(inp2, target2, mask2, 0.1)
    np.testing.assert_allclose(np.asarray(out2), np.asarray(ref2),
                               rtol=1e-5, atol=1e-5)

    inp2_bf16 = inp2.astype(jnp.bfloat16)
    out3 = jax.block_until_ready(
        label_smoothing_loss(inp2_bf16, target2, mask2, smoothing=0.1))
    ref3 = _reference(inp2_bf16.astype(jnp.float32), target2, mask2, 0.1)
    np.testing.assert_allclose(np.asarray(out3), np.asarray(ref3),
                               rtol=2e-2, atol=2e-2)

    print("KERNEL_OK")
</pallas_src>

<mosaic_0001>
module attributes {stable_mosaic.version = 11 : i64} {
  func.func @kernel(%arg0: i32, %arg1: i32, %arg2: memref<8x32xf32, #tpu.memory_space<vmem>>, %arg3: memref<8x1xi32, #tpu.memory_space<vmem>>, %arg4: memref<8x1xf32, #tpu.memory_space<vmem>>, %arg5: memref<1x1x1xf32, #tpu.memory_space<vmem>>, %arg6: memref<8x1xf32, #tpu.memory_space<vmem>>) attributes {dimension_semantics = [#tpu.dimension_semantics<parallel>, #tpu.dimension_semantics<arbitrary>], iteration_bounds = array<i64: 2, 1>, scalar_prefetch = 0 : i64, scratch_operands = 1 : i64, tpu.core_type = #tpu.core_type<tc>, window_params = [{transform_indices = @transform_0, window_bounds = array<i64: 8, 32>}, {transform_indices = @transform_1, window_bounds = array<i64: 8, 1>}, {transform_indices = @transform_2, window_bounds = array<i64: 8, 1>}, {transform_indices = @transform_3, window_bounds = array<i64: 1, 1, 1>}]} {
    %c0_i32 = arith.constant 0 : i32
    %0 = arith.cmpi eq, %arg1, %c0_i32 : i32
    %1 = arith.extui %0 : i1 to i32
    %c0_i32_0 = arith.constant 0 : i32
    %2 = arith.cmpi ne, %1, %c0_i32_0 : i32
    scf.if %2 {
      %cst_12 = arith.constant 0.000000e+00 : f32
      %23 = vector.broadcast %cst_12 : f32 to vector<8x1xf32>
      %c0_13 = arith.constant 0 : index
      %c0_14 = arith.constant 0 : index
      %24 = vector.load %arg6[%c0_13, %c0_14] : memref<8x1xf32, #tpu.memory_space<vmem>>, vector<8x1xf32>
      tpu.vector_store %arg6[%c0_13, %c0_14], %23 {strides = array<i32>} : memref<8x1xf32, #tpu.memory_space<vmem>>, vector<8x1xf32>,
    } else {
    }
    %c0 = arith.constant 0 : index
    %c0_1 = arith.constant 0 : index
    %3 = vector.load %arg2[%c0, %c0_1] : memref<8x32xf32, #tpu.memory_space<vmem>>, vector<8x32xf32>
    %4 = tpu.iota {dimensions = array<i32: 1>} : vector<8x32xi32>
    %c0_2 = arith.constant 0 : index
    %c0_3 = arith.constant 0 : index
    %5 = vector.load %arg3[%c0_2, %c0_3] : memref<8x1xi32, #tpu.memory_space<vmem>>, vector<8x1xi32>
    %c32_i32 = arith.constant 32 : i32
    %6 = arith.muli %arg1, %c32_i32 : i32
    %7 = vector.broadcast %6 : i32 to vector<8x1xi32>
    %8 = arith.subi %5, %7 : vector<8x1xi32>
    %9 = vector.broadcast %8 : vector<8x1xi32> to vector<8x32xi32>
    %10 = arith.cmpi eq, %4, %9 : vector<8x32xi32>
    %cst = arith.constant 0.899999976 : f32
    %cst_4 = arith.constant 0.0032258064 : f32
    %11 = vector.broadcast %cst : f32 to vector<8x32xf32>
    %12 = vector.broadcast %cst_4 : f32 to vector<8x32xf32>
    %13 = arith.select %10, %11, %12 : vector<8x32xi1>, vector<8x32xf32>
    %14 = arith.mulf %13, %3 : vector<8x32xf32>
    %c0_5 = arith.constant 0 : index
    %c0_6 = arith.constant 0 : index
    %15 = vector.load %arg6[%c0_5, %c0_6] : memref<8x1xf32, #tpu.memory_space<vmem>>, vector<8x1xf32>
    %cst_7 = arith.constant dense<0.000000e+00> : vector<8xf32>
    %16 = vector.multi_reduction <add>, %14, %cst_7 [1] : vector<8x32xf32> to vector<8xf32>
    %17 = vector.shape_cast %16 : vector<8xf32> to vector<8x1xf32>
    %18 = arith.addf %15, %17 : vector<8x1xf32>
    %c0_8 = arith.constant 0 : index
    %c0_9 = arith.constant 0 : index
    %19 = vector.load %arg6[%c0_8, %c0_9] : memref<8x1xf32, #tpu.memory_space<vmem>>, vector<8x1xf32>
    tpu.vector_store %arg6[%c0_8, %c0_9], %18 {strides = array<i32>} : memref<8x1xf32, #tpu.memory_space<vmem>>, vector<8x1xf32>,
    %c0_i32_10 = arith.constant 0 : i32
    %20 = arith.cmpi eq, %arg1, %c0_i32_10 : i32
    %21 = arith.extui %20 : i1 to i32
    %c0_i32_11 = arith.constant 0 : i32
    %22 = arith.cmpi ne, %21, %c0_i32_11 : i32
    scf.if %22 {
      %c0_12 = arith.constant 0 : index
      %c0_13 = arith.constant 0 : index
      %23 = vector.load %arg6[%c0_12, %c0_13] : memref<8x1xf32, #tpu.memory_space<vmem>>, vector<8x1xf32>
      %cst_14 = arith.constant dense<0.000000e+00> : vector<8xf32>
      %24 = vector.multi_reduction <add>, %23, %cst_14 [1] : vector<8x1xf32> to vector<8xf32>
      %25 = vector.shape_cast %24 : vector<8xf32> to vector<8x1xf32>
      %cst_15 = arith.constant -0.668481708 : f32
      %26 = vector.broadcast %cst_15 : f32 to vector<8x1xf32>
      %27 = arith.subf %26, %25 : vector<8x1xf32>
      %c8_i32 = arith.constant 8 : i32
      %28 = arith.muli %arg0, %c8_i32 : i32
      %29 = tpu.iota {dimensions = array<i32: 0>} : vector<8x1xi32>
      %30 = vector.broadcast %28 : i32 to vector<8x1xi32>
      %31 = arith.addi %30, %29 : vector<8x1xi32>
      %c16_i32 = arith.constant 16 : i32
      %32 = vector.broadcast %c16_i32 : i32 to vector<8x1xi32>
      %33 = arith.cmpi slt, %31, %32 : vector<8x1xi32>
      %c0_16 = arith.constant 0 : index
      %c0_17 = arith.constant 0 : index
      %34 = vector.load %arg4[%c0_16, %c0_17] : memref<8x1xf32, #tpu.memory_space<vmem>>, vector<8x1xf32>
      %35 = arith.mulf %27, %34 : vector<8x1xf32>
      %cst_18 = arith.constant 0.000000e+00 : f32
      %36 = vector.broadcast %cst_18 : f32 to vector<8x1xf32>
      %37 = arith.select %33, %35, %36 : vector<8x1xi1>, vector<8x1xf32>
      %cst_19 = arith.constant dense<0.000000e+00> : vector<1xf32>
      %38 = vector.multi_reduction <add>, %37, %cst_19 [0] : vector<8x1xf32> to vector<1xf32>
      %39 = vector.shape_cast %38 : vector<1xf32> to vector<1x1xf32>
      %c0_20 = arith.constant 0 : index
      %c0_21 = arith.constant 0 : index
      %c0_22 = arith.constant 0 : index
      %40 = vector.load %arg5[%c0_20, %c0_21, %c0_22] : memref<1x1x1xf32, #tpu.memory_space<vmem>>, vector<1x1x1xf32>
      %41 = vector.shape_cast %40 : vector<1x1x1xf32> to vector<1x1xf32>
      %42 = vector.shape_cast %39 : vector<1x1xf32> to vector<1x1x1xf32>
      tpu.vector_store %arg5[%c0_20, %c0_21, %c0_22], %42 {strides = array<i32>} : memref<1x1x1xf32, #tpu.memory_space<vmem>>, vector<1x1x1xf32>,
    } else {
    }
    return
  }
  func.func @transform_0(%arg0: i32, %arg1: i32) -> (i32, i32) {
    %c0_i32 = arith.constant 0 : i32
    return %arg0, %arg1 : i32, i32
  }
  func.func @transform_1(%arg0: i32, %arg1: i32) -> (i32, i32) {
    %c0_i32 = arith.constant 0 : i32
    %c0_i32_0 = arith.constant 0 : i32
    return %arg0, %c0_i32 : i32, i32
  }
  func.func @transform_2(%arg0: i32, %arg1: i32) -> (i32, i32) {
    %c0_i32 = arith.constant 0 : i32
    %c0_i32_0 = arith.constant 0 : i32
    return %arg0, %c0_i32 : i32, i32
  }
  func.func @transform_3(%arg0: i32, %arg1: i32) -> (i32, i32, i32) {
    %c0_i32 = arith.constant 0 : i32
    %c0_i32_0 = arith.constant 0 : i32
    %c0_i32_1 = arith.constant 0 : i32
    return %arg0, %c0_i32, %c0_i32_0 : i32, i32, i32
  }
}

</mosaic_0001>

<bundles_post_ra>
// kernel: tpu_custom_call.1
= control target key start
LH: loop header
LB: loop body
LE: loop exit
PB: predicated region body
PF: predicated region fallthrough
CT: control target
= control target key end

     0   :  { %s440_s12 = smov 0   ;;  %s442_s13 = smov 0   ;;  %s491_s0 = inlined_call_operand.vmem [shape: f32[16,32], index: 0, kind: input, shape index: {}]   ;;  %s492_s1 = inlined_call_operand.vmem [shape: s32[16,1], index: 1, kind: input, shape index: {}]   ;;  %s493_s2 = inlined_call_operand.vmem [shape: f32[16,1], index: 2, kind: input, shape index: {}]   ;;  %s494_s3 = inlined_call_operand.vmem [shape: f32[2,1,1], index: 3, kind: output, shape index: {}]  }
   0x1   :  { %s444_s14 = smov 0  }
   0x2 LB: > { %s25_s15 = sadd.s32 1, %s411_s13  ;;  %p358_p0 = scmp.ge.s32.totalorder %s415_s14, 1  ;;  %s415_s14 = sphi %s444_s14, %s13_s14   ;;  %s411_s13 = sphi %s442_s13, %s496_s13   ;;  %s407_s12 = sphi %s440_s12, %s495_s12  }
   0x3   : > { %p27_p1 = scmp.ge.s32.totalorder %s25_s15, 2  ;;  %p171_p2 = scmp.lt.s32.totalorder %s415_s14, 3 }
   0x5   : > { %s498_s15 = smov (%p27_p1, %s25_s15), 0  ;;  %p172_p3 = pnand %p358_p0, %p171_p2 }
   0x6   : > { %p203_p4 = scmp.lt.s32.totalorder (!%p172_p3), %s407_s12, 1  ;;  %v417_v0 = vmov (!%p172_p3), 0   ;;  %vm225_vm0 = vcmask (!%p172_p3), 7168   ;;  %v418_v2 = vmov (!%p172_p3), 0.0   ;;  %v228_v3 = vlaneseq (!%p172_p3)  ;;  %s362_s24 = sshll.u32 (!%p172_p3), %s407_s12, 3 }
   0x7   : > { %175 = sbr.rel (%p172_p3) target bundleno = 323 (0x143), region = 32  ;;  %392 = vset.pattern.permute.xlu0 (!%p172_p3), %v417_v0  ;;  %226 = vst.msk [vmem:[#allocation2] sm:$0xff] (!%p172_p3), %vm225_vm0, %v418_v2  ;;  %v419_v7 = vmov (!%p172_p3), 0.0032258064   ;;  %vm241_vm2 = vcmask (!%p172_p3), 261120   ;;  %v257_v15 = vstv (!%p172_p3), %s362_s24  ;;  %vm270_vm4 = vcmask (!%p172_p3), 0  }
   0x8   : > { %v229_v4 = vand.u32 (!%p172_p3), 127, %v228_v3  ;;  %v256_v14 = vshrl.u32 (!%p172_p3), %v228_v3, 7 }
   0xa   : > { %v258_v16 = vadd.s32 (!%p172_p3), %v257_v15, %v256_v14 }
   0xc   : > { %vm259_vm3 = vcmp.lt.s32.totalorder (!%p172_p3), %v258_v16, 16 }
   0xe   : > { %s462_s16 = scalar_select %p203_p4, %s407_s12, 1  ;;  %v240_v11 = vld [vmem:[#allocation2] sm:$0xff] }
  0x10   : > { %s359_s17 = sshll.u32 %s462_s16, 3  ;;  %s220_s30 = scalar_lea.vmem %s494_s3, %s462_s16 }
  0x11   : > { %s213_s20 = scalar_lea.vmem %s492_s1, %s359_s17  ;;  %s209_s23 = scalar_lea.vmem %s491_s0, %s359_s17 }
  0x12   : > { %v230_v1 = vld [vmem:[%s213_s20] sm:$0xff]  ;;  %s217_s27 = scalar_lea.vmem %s493_s2, %s359_s17 }
  0x13   : > { %235 = vperm.xlu0 %392, %v230_v1   ;;  %v227_v6 = vld [vmem:[%s209_s23] sm:$0xff] }
  0x14   : > { %v260_v17 = vld [vmem:[%s217_s27] sm:$0xff] }
  0x92   : > { %v236_v5 = vpop.permute.xlu0 %235 }
  0x93   : > { %vm237_vm1 = vcmp.eq.s32.totalorder %v229_v4, %v236_v5 }
  0x94   : > { %v238_v8 = vsel %vm237_vm1, 0.9, %v419_v7 }
  0x95   : > { %v239_v9 = vmul.f32 %v238_v8, %v227_v6 }
  0x97   : > { %v242_v10 = vsel %vm241_vm2, %v239_v9, 0.0 }
  0x98   : > { %243 = vadd.xlane.f32.xlu0 %v242_v10 }
 0x125   : > { %v244_v12 = vpop.xlane.xlu0 %243 }
 0x126   : > { %v245_v13 = vadd.f32 %v244_v12, %v240_v11 }
 0x128   : > { %247 = vst.msk [vmem:[#allocation2] sm:$0xff] %vm225_vm0, %v245_v13 }
 0x12f   : > { %v251_v18 = vld [vmem:[#allocation2] sm:$0xff] }
 0x130   : > { %v253_v19 = vsub.f32 -0.6684817, %v251_v18 }
 0x132   : > { %v261_v20 = vmul.f32 %v260_v17, %v253_v19 }
 0x134   : > { %v262_v21 = vsel %vm259_vm3, %v261_v20, 0.0 }
 0x135   : > { %v263_v22 = vsel %vm225_vm0, %v262_v21, 0.0 }
 0x136   : > { %v264_v23 = vrot.slane %v263_v22, 4 }
 0x138   : > { %v265_v24 = vadd.f32 %v264_v23, %v263_v22 }
 0x13a   : > { %v266_v25 = vrot.slane %v265_v24, 2 }
 0x13c   : > { %v267_v26 = vadd.f32 %v266_v25, %v265_v24 }
 0x13e   : > { %v268_v27 = vrot.slane %v267_v26, 1 }
 0x140   : > { %v269_v28 = vadd.f32 %v268_v27, %v267_v26 }
 0x142   : > { %271 = vst.msk [vmem:[%s220_s30] sm:$0x1] %vm270_vm4, %v269_v28 }
 0x143 PF: > { %s13_s14 = sadd.s32 1, %s415_s14   ;;  %s495_s12 = smov %s411_s13 }
 0x144   : > { %p10_p5 = scmp.ge.s32.totalorder %s13_s14, 4   ;;  %s496_s13 = smov %s498_s15 }
 0x146   :  { %12 = sbr.rel (!%p10_p5) target bundleno = 2 (0x2), region = 76 }

</bundles_post_ra>
